<compile_context>
chip_gen: v7x
topology: tpu7x:2x2x1
jax: 0.10.0
libtpu: 0.0.40
codegen_flags: <defaults>
</compile_context>

<pallas_src>
import functools

import jax
import jax.numpy as jnp
from jax.experimental import pallas as pl
from jax.experimental.pallas import tpu as pltpu

# Logical layer dims of IrisNet: 4 -> 128 -> 64 -> 32 -> 3
IN_F, H1, H2, H3, OUT_F = 4, 128, 64, 32, 3
OUT_PAD = 128          # W4/b4 padded to 128 lanes for the in-VMEM matmul only
DEFAULT_TILE_B = 4096  # large tile to amortize per-step overhead


def _round_up(n, m):
    return (n + m - 1) // m * m


def _effective_tile_b(batch, tile_b):
    """Pick tile_b from a small fixed set so it never varies per batch size."""
    tile_b = _round_up(int(tile_b), 8)
    if batch <= 256:
        return min(tile_b, 256)
    if batch <= 1024:
        return min(tile_b, 1024)
    return tile_b


def iris_mlp_kernel(x_ref,
                    w1_ref, b1_ref,
                    w2_ref, b2_ref,
                    w3_ref, b3_ref,
                    w4_ref, b4_ref,
                    o_ref):
    """Fused forward for one (tile_b, 4) batch tile:
       relu(relu(relu(x@W1+b1)@W2+b2)@W3+b3)@W4+b4.
       The last matmul runs 128 lanes wide; only 3 lanes are stored."""
    x = x_ref[...]                                                     # (tb, 4)
    h = jnp.dot(x, w1_ref[...], preferred_element_type=jnp.float32) + b1_ref[...]
    h = jnp.maximum(h, 0.0)                                            # (tb, 128)
    h = jnp.dot(h, w2_ref[...], preferred_element_type=jnp.float32) + b2_ref[...]
    h = jnp.maximum(h, 0.0)                                            # (tb, 64)
    h = jnp.dot(h, w3_ref[...], preferred_element_type=jnp.float32) + b3_ref[...]
    h = jnp.maximum(h, 0.0)                                            # (tb, 32)
    out = jnp.dot(h, w4_ref[...], preferred_element_type=jnp.float32) + b4_ref[...]
    # Narrow store: only the 3 real output lanes go to HBM.
    o_ref[...] = out[:, :OUT_F].astype(o_ref.dtype)                    # (tb, 3)


@functools.partial(jax.jit, static_argnames=("tile_b",))
def _iris_forward(x, p, tile_b):
    """x: (B, 4) float32. Returns (B, 3) float32."""
    batch = x.shape[0]
    grid = (pl.cdiv(batch, tile_b),)

    # Weights/biases: full-shape blocks with constant index maps -> fetched
    # once, VMEM-resident.  Only x / out tiles are pipelined along the batch.
    const = lambda i: (0, 0)
    in_specs = [
        pl.BlockSpec((tile_b, IN_F), lambda i: (i, 0)),  # x tile (B, 4)
        pl.BlockSpec((IN_F, H1), const),                 # W1 (4, 128)
        pl.BlockSpec((1, H1), const),                    # b1
        pl.BlockSpec((H1, H2), const),                   # W2
        pl.BlockSpec((1, H2), const),                    # b2
        pl.BlockSpec((H2, H3), const),                   # W3
        pl.BlockSpec((1, H3), const),                    # b3
        pl.BlockSpec((H3, OUT_PAD), const),              # W4 padded (32, 128)
        pl.BlockSpec((1, OUT_PAD), const),               # b4 padded (1, 128)
    ]
    out_specs = pl.BlockSpec((tile_b, OUT_F), lambda i: (i, 0))

    return pl.pallas_call(
        iris_mlp_kernel,
        out_shape=jax.ShapeDtypeStruct((batch, OUT_F), jnp.float32),
        grid=grid,
        in_specs=in_specs,
        out_specs=out_specs,
        compiler_params=pltpu.CompilerParams(
            dimension_semantics=("parallel",),   # batch-parallel across TCs
        ),
    )(x,
      p["w1"], p["b1"],
      p["w2"], p["b2"],
      p["w3"], p["b3"],
      p["w4"], p["b4"])


def iris_net_forward(x, padded_params, tile_b=DEFAULT_TILE_B):
    """x: (B, 4) float32; padded_params from prepare_params(). Returns (B, 3)."""
    batch = x.shape[0]
    eff_tile_b = _effective_tile_b(batch, tile_b)
    return _iris_forward(x, padded_params, eff_tile_b)


def init_params(key):
    """Torch nn.Linear-style init (U[-1/sqrt(fan_in), 1/sqrt(fan_in)]).
    Weights stored as (in_features, out_features); biases as (1, out_features)."""
    dims = [(IN_F, H1), (H1, H2), (H2, H3), (H3, OUT_F)]
    params = {}
    for i, (fan_in, fan_out) in enumerate(dims, start=1):
        key, kw, kb = jax.random.split(key, 3)
        bound = 1.0 / jnp.sqrt(float(fan_in))
        params[f"w{i}"] = jax.random.uniform(
            kw, (fan_in, fan_out), jnp.float32, -bound, bound)
        params[f"b{i}"] = jax.random.uniform(
            kb, (1, fan_out), jnp.float32, -bound, bound)
    return params


def prepare_params(params):
    """One-time zero-padding of W4/b4 (N: 3 -> 128) for the in-VMEM matmul.
    (Padded lanes never reach HBM: the kernel stores only the first 3.)"""
    w4p = jnp.zeros((H3, OUT_PAD), jnp.float32).at[:, :OUT_F].set(params["w4"])
    b4p = jnp.zeros((1, OUT_PAD), jnp.float32).at[:, :OUT_F].set(params["b4"])
    out = dict(params)
    out["w4"], out["b4"] = w4p, b4p
    return out


def reference_forward(x, params):
    h = jnp.maximum(x @ params["w1"] + params["b1"], 0.0)
    h = jnp.maximum(h @ params["w2"] + params["b2"], 0.0)
    h = jnp.maximum(h @ params["w3"] + params["b3"], 0.0)
    return h @ params["w4"] + params["b4"]


if __name__ == "__main__":
    key = jax.random.PRNGKey(0)
    key, kx = jax.random.split(key)

    params = init_params(key)
    padded_params = prepare_params(params)

    # Iris-sized batch (4 input features).
    B = 8
    x = jax.random.normal(kx, (B, IN_F), jnp.float32)
    out = jax.block_until_ready(iris_net_forward(x, padded_params))
    ref = reference_forward(x, params)
    assert out.shape == (B, OUT_F)
    assert jnp.allclose(out, ref, atol=1e-5, rtol=1e-5)

    # Mid-size batch (single grid step at the 1024 bucket).
    key, kx2 = jax.random.split(key)
    B2 = 300
    x2 = jax.random.normal(kx2, (B2, IN_F), jnp.float32)
    out2 = jax.block_until_ready(iris_net_forward(x2, padded_params))
    ref2 = reference_forward(x2, params)
    assert out2.shape == (B2, OUT_F)
    assert jnp.allclose(out2, ref2, atol=1e-5, rtol=1e-5)

    # Multi-step grid with a ragged last block (masked tail writes).
    key, kx3 = jax.random.split(key)
    B3 = 2500
    x3 = jax.random.normal(kx3, (B3, IN_F), jnp.float32)
    out3 = jax.block_until_ready(iris_net_forward(x3, padded_params, tile_b=1024))
    ref3 = reference_forward(x3, params)
    assert out3.shape == (B3, OUT_F)
    assert jnp.allclose(out3, ref3, atol=1e-5, rtol=1e-5)

    print("KERNEL_OK")
</pallas_src>

<mosaic_0001>
module attributes {stable_mosaic.version = 11 : i64} {
  func.func @iris_mlp_kernel(%arg0: i32, %arg1: memref<256x4xf32, #tpu.memory_space<vmem>>, %arg2: memref<4x128xf32, #tpu.memory_space<vmem>>, %arg3: memref<1x128xf32, #tpu.memory_space<vmem>>, %arg4: memref<128x64xf32, #tpu.memory_space<vmem>>, %arg5: memref<1x64xf32, #tpu.memory_space<vmem>>, %arg6: memref<64x32xf32, #tpu.memory_space<vmem>>, %arg7: memref<1x32xf32, #tpu.memory_space<vmem>>, %arg8: memref<32x128xf32, #tpu.memory_space<vmem>>, %arg9: memref<1x128xf32, #tpu.memory_space<vmem>>, %arg10: memref<256x3xf32, #tpu.memory_space<vmem>>) attributes {dimension_semantics = [#tpu.dimension_semantics<parallel>], iteration_bounds = array<i64: 1>, scalar_prefetch = 0 : i64, scratch_operands = 0 : i64, tpu.core_type = #tpu.core_type<tc>, window_params = [{transform_indices = @transform_0, window_bounds = array<i64: 256, 4>}, {pipeline_mode = #tpu.pipeline_mode<synchronous>, transform_indices = @transform_1, window_bounds = array<i64: 4, 128>}, {pipeline_mode = #tpu.pipeline_mode<synchronous>, transform_indices = @transform_2, window_bounds = array<i64: 1, 128>}, {pipeline_mode = #tpu.pipeline_mode<synchronous>, transform_indices = @transform_3, window_bounds = array<i64: 128, 64>}, {pipeline_mode = #tpu.pipeline_mode<synchronous>, transform_indices = @transform_4, window_bounds = array<i64: 1, 64>}, {pipeline_mode = #tpu.pipeline_mode<synchronous>, transform_indices = @transform_5, window_bounds = array<i64: 64, 32>}, {pipeline_mode = #tpu.pipeline_mode<synchronous>, transform_indices = @transform_6, window_bounds = array<i64: 1, 32>}, {pipeline_mode = #tpu.pipeline_mode<synchronous>, transform_indices = @transform_7, window_bounds = array<i64: 32, 128>}, {pipeline_mode = #tpu.pipeline_mode<synchronous>, transform_indices = @transform_8, window_bounds = array<i64: 1, 128>}, {transform_indices = @transform_9, window_bounds = array<i64: 256, 3>}]} {
    %c0 = arith.constant 0 : index
    %c0_0 = arith.constant 0 : index
    %0 = vector.load %arg1[%c0, %c0_0] : memref<256x4xf32, #tpu.memory_space<vmem>>, vector<256x4xf32>
    %c0_1 = arith.constant 0 : index
    %c0_2 = arith.constant 0 : index
    %1 = vector.load %arg2[%c0_1, %c0_2] : memref<4x128xf32, #tpu.memory_space<vmem>>, vector<4x128xf32>
    %cst = arith.constant dense<0.000000e+00> : vector<256x128xf32>
    %2 = tpu.matmul %0, %1, %cst {dimension_numbers = #tpu.dot_dimension_numbers<[1], [0], [0], [1], [0, 0, 1, 1], [], []>} : vector<256x4xf32>, vector<4x128xf32>, vector<256x128xf32> -> vector<256x128xf32>
    %c0_3 = arith.constant 0 : index
    %c0_4 = arith.constant 0 : index
    %3 = vector.load %arg3[%c0_3, %c0_4] : memref<1x128xf32, #tpu.memory_space<vmem>>, vector<1x128xf32>
    %4 = vector.broadcast %3 : vector<1x128xf32> to vector<256x128xf32>
    %5 = arith.addf %2, %4 : vector<256x128xf32>
    %cst_5 = arith.constant 0.000000e+00 : f32
    %6 = vector.broadcast %cst_5 : f32 to vector<256x128xf32>
    %7 = arith.maximumf %5, %6 : vector<256x128xf32>
    %c0_6 = arith.constant 0 : index
    %c0_7 = arith.constant 0 : index
    %8 = vector.load %arg4[%c0_6, %c0_7] : memref<128x64xf32, #tpu.memory_space<vmem>>, vector<128x64xf32>
    %cst_8 = arith.constant dense<0.000000e+00> : vector<256x64xf32>
    %9 = tpu.matmul %7, %8, %cst_8 {dimension_numbers = #tpu.dot_dimension_numbers<[1], [0], [0], [1], [0, 0, 1, 1], [], []>} : vector<256x128xf32>, vector<128x64xf32>, vector<256x64xf32> -> vector<256x64xf32>
    %c0_9 = arith.constant 0 : index
    %c0_10 = arith.constant 0 : index
    %10 = vector.load %arg5[%c0_9, %c0_10] : memref<1x64xf32, #tpu.memory_space<vmem>>, vector<1x64xf32>
    %11 = vector.broadcast %10 : vector<1x64xf32> to vector<256x64xf32>
    %12 = arith.addf %9, %11 : vector<256x64xf32>
    %cst_11 = arith.constant 0.000000e+00 : f32
    %13 = vector.broadcast %cst_11 : f32 to vector<256x64xf32>
    %14 = arith.maximumf %12, %13 : vector<256x64xf32>
    %c0_12 = arith.constant 0 : index
    %c0_13 = arith.constant 0 : index
    %15 = vector.load %arg6[%c0_12, %c0_13] : memref<64x32xf32, #tpu.memory_space<vmem>>, vector<64x32xf32>
    %cst_14 = arith.constant dense<0.000000e+00> : vector<256x32xf32>
    %16 = tpu.matmul %14, %15, %cst_14 {dimension_numbers = #tpu.dot_dimension_numbers<[1], [0], [0], [1], [0, 0, 1, 1], [], []>} : vector<256x64xf32>, vector<64x32xf32>, vector<256x32xf32> -> vector<256x32xf32>
    %c0_15 = arith.constant 0 : index
    %c0_16 = arith.constant 0 : index
    %17 = vector.load %arg7[%c0_15, %c0_16] : memref<1x32xf32, #tpu.memory_space<vmem>>, vector<1x32xf32>
    %18 = vector.broadcast %17 : vector<1x32xf32> to vector<256x32xf32>
    %19 = arith.addf %16, %18 : vector<256x32xf32>
    %cst_17 = arith.constant 0.000000e+00 : f32
    %20 = vector.broadcast %cst_17 : f32 to vector<256x32xf32>
    %21 = arith.maximumf %19, %20 : vector<256x32xf32>
    %c0_18 = arith.constant 0 : index
    %c0_19 = arith.constant 0 : index
    %22 = vector.load %arg8[%c0_18, %c0_19] : memref<32x128xf32, #tpu.memory_space<vmem>>, vector<32x128xf32>
    %cst_20 = arith.constant dense<0.000000e+00> : vector<256x128xf32>
    %23 = tpu.matmul %21, %22, %cst_20 {dimension_numbers = #tpu.dot_dimension_numbers<[1], [0], [0], [1], [0, 0, 1, 1], [], []>} : vector<256x32xf32>, vector<32x128xf32>, vector<256x128xf32> -> vector<256x128xf32>
    %c0_21 = arith.constant 0 : index
    %c0_22 = arith.constant 0 : index
    %24 = vector.load %arg9[%c0_21, %c0_22] : memref<1x128xf32, #tpu.memory_space<vmem>>, vector<1x128xf32>
    %25 = vector.broadcast %24 : vector<1x128xf32> to vector<256x128xf32>
    %26 = arith.addf %23, %25 : vector<256x128xf32>
    %27 = vector.extract_strided_slice %26 {offsets = [0, 0], sizes = [256, 3], strides = [1, 1]} : vector<256x128xf32> to vector<256x3xf32>
    %c0_23 = arith.constant 0 : index
    %c0_24 = arith.constant 0 : index
    %28 = vector.load %arg10[%c0_23, %c0_24] : memref<256x3xf32, #tpu.memory_space<vmem>>, vector<256x3xf32>
    tpu.vector_store %arg10[%c0_23, %c0_24], %27 {strides = array<i32>} : memref<256x3xf32, #tpu.memory_space<vmem>>, vector<256x3xf32>,
    return
  }
  func.func @transform_0(%arg0: i32) -> (i32, i32) {
    %c0_i32 = arith.constant 0 : i32
    %c0_i32_0 = arith.constant 0 : i32
    return %arg0, %c0_i32 : i32, i32
  }
  func.func @transform_1(%arg0: i32) -> (i32, i32) {
    %c0_i32 = arith.constant 0 : i32
    %c0_i32_0 = arith.constant 0 : i32
    %c0_i32_1 = arith.constant 0 : i32
    return %c0_i32, %c0_i32_0 : i32, i32
  }
  func.func @transform_2(%arg0: i32) -> (i32, i32) {
    %c0_i32 = arith.constant 0 : i32
    %c0_i32_0 = arith.constant 0 : i32
    %c0_i32_1 = arith.constant 0 : i32
    return %c0_i32, %c0_i32_0 : i32, i32
  }
  func.func @transform_3(%arg0: i32) -> (i32, i32) {
    %c0_i32 = arith.constant 0 : i32
    %c0_i32_0 = arith.constant 0 : i32
    %c0_i32_1 = arith.constant 0 : i32
    return %c0_i32, %c0_i32_0 : i32, i32
  }
  func.func @transform_4(%arg0: i32) -> (i32, i32) {
    %c0_i32 = arith.constant 0 : i32
    %c0_i32_0 = arith.constant 0 : i32
    %c0_i32_1 = arith.constant 0 : i32
    return %c0_i32, %c0_i32_0 : i32, i32
  }
  func.func @transform_5(%arg0: i32) -> (i32, i32) {
    %c0_i32 = arith.constant 0 : i32
    %c0_i32_0 = arith.constant 0 : i32
    %c0_i32_1 = arith.constant 0 : i32
    return %c0_i32, %c0_i32_0 : i32, i32
  }
  func.func @transform_6(%arg0: i32) -> (i32, i32) {
    %c0_i32 = arith.constant 0 : i32
    %c0_i32_0 = arith.constant 0 : i32
    %c0_i32_1 = arith.constant 0 : i32
    return %c0_i32, %c0_i32_0 : i32, i32
  }
  func.func @transform_7(%arg0: i32) -> (i32, i32) {
    %c0_i32 = arith.constant 0 : i32
    %c0_i32_0 = arith.constant 0 : i32
    %c0_i32_1 = arith.constant 0 : i32
    return %c0_i32, %c0_i32_0 : i32, i32
  }
  func.func @transform_8(%arg0: i32) -> (i32, i32) {
    %c0_i32 = arith.constant 0 : i32
    %c0_i32_0 = arith.constant 0 : i32
    %c0_i32_1 = arith.constant 0 : i32
    return %c0_i32, %c0_i32_0 : i32, i32
  }
  func.func @transform_9(%arg0: i32) -> (i32, i32) {
    %c0_i32 = arith.constant 0 : i32
    %c0_i32_0 = arith.constant 0 : i32
    return %arg0, %c0_i32 : i32, i32
  }
}

</mosaic_0001>

<bundles_post_ra>
// kernel: _iris_forward.1
= control target key start
LH: loop header
LB: loop body
LE: loop exit
PB: predicated region body
PF: predicated region fallthrough
CT: control target
= control target key end

     0   :  { %vm169_vm0 = vcmask 1043456   ;;  %vm72_vm1 = vcmask 31744   ;;  %vm725_vm2 = vcmask 523264   ;;  %vm1090_vm3 = vcmask 261120   ;;  %s2499_s0 = inlined_call_operand.vmem [shape: f32[8,4], index: 0, kind: input, shape index: {}]   ;;  %s2500_s1 = inlined_call_operand.vmem [shape: f32[4,128], index: 1, kind: input, shape index: {}]   ;;  %s2501_s2 = inlined_call_operand.vmem [shape: f32[1,128], index: 2, kind: input, shape index: {}]   ;;  %s2502_s3 = inlined_call_operand.vmem [shape: f32[128,64], index: 3, kind: input, shape index: {}]   ;;  %s2503_s4 = inlined_call_operand.vmem [shape: f32[1,64], index: 4, kind: input, shape index: {}]   ;;  %s2504_s5 = inlined_call_operand.vmem [shape: f32[64,32], index: 5, kind: input, shape index: {}]   ;;  %s2505_s6 = inlined_call_operand.vmem [shape: f32[1,32], index: 6, kind: input, shape index: {}]   ;;  %s2506_s7 = inlined_call_operand.vmem [shape: f32[32,128], index: 7, kind: input, shape index: {}]   ;;  %s2507_s8 = inlined_call_operand.vmem [shape: f32[1,128], index: 8, kind: input, shape index: {}]   ;;  %s2508_s9 = inlined_call_operand.vmem [shape: f32[8,3], index: 9, kind: output, shape index: {}]  }
   0x1   :  { %v64_v0 = vld [vmem:[%s2500_s1] sm:$0xf]  ;;  %v33_v2 = vld [vmem:[%s2499_s0 + $0x8] sm:$0xff]  ;;  %v34_v3 = vld [vmem:[%s2499_s0 + $0x10] sm:$0xff]  ;;  %vm1412_vm4 = vcmask 23552  }
   0x2   :  { %v32_v1 = vld [vmem:[%s2499_s0] sm:$0xff]  ;;  %1743 = vmatprep.subr.msk.mxu0 %vm169_vm0, %v64_v0  ;;  %v35_v4 = vld [vmem:[%s2499_s0 + $0x18] sm:$0xff]  ;;  %v37_v6 = vld [vmem:[%s2499_s0 + $0x28] sm:$0xff] }
   0x3   :  { %1745 = vmatprep.mubr.msk.f32.mxu0 %vm72_vm1, %v32_v1  ;;  %1744 = vmatpush3.msk.msra.mxu0 %vm169_vm0, %v64_v0  ;;  %v36_v5 = vld [vmem:[%s2499_s0 + $0x20] sm:$0xff]  ;;  %v38_v7 = vld [vmem:[%s2499_s0 + $0x30] sm:$0xff]  ;;  %v431_v9 = vld [vmem:[%s2502_s3 + $0x8] sm:$0xff] }
   0x4   :  { %1746 = vmatmul.mubr.msk.f32.vlgmr.msra.gmra.mrb[0].mxu0 %vm72_vm1, %v33_v2  ;;  %v430_v8 = vld [vmem:[%s2502_s3] sm:$0xff]  ;;  %v432_v10 = vld [vmem:[%s2502_s3 + $0x10] sm:$0xff]  ;;  %v39_v11 = vld [vmem:[%s2499_s0 + $0x38] sm:$0xff] }
   0x5   :  { %1748 = vmatprep.mubr.msk.f32.mxu0 %vm72_vm1, %v34_v3  ;;  %v1993_v12 = vpack.c.bf16 %v431_v9, %v430_v8  ;;  %v433_v13 = vld [vmem:[%s2502_s3 + $0x18] sm:$0xff]  ;;  %v40_v14 = vld [vmem:[%s2499_s0 + $0x40] sm:$0xff]  ;;  %v435_v17 = vld [vmem:[%s2502_s3 + $0x28] sm:$0xff] }
   0x6   :  { %v1997_v15 = vpack.c.bf16 %v433_v13, %v432_v10  ;;  %v434_v16 = vld [vmem:[%s2502_s3 + $0x20] sm:$0xff]  ;;  %v41_v18 = vld [vmem:[%s2499_s0 + $0x48] sm:$0xff]  ;;  %v42_v20 = vld [vmem:[%s2499_s0 + $0x50] sm:$0xff] }
   0x7   :  { %1994 = vmatprep.subr.bf16.mxu1 %v1993_v12  ;;  %v2001_v19 = vpack.c.bf16 %v435_v17, %v434_v16  ;;  %v436_v21 = vld [vmem:[%s2502_s3 + $0x30] sm:$0xff]  ;;  %v437_v22 = vld [vmem:[%s2502_s3 + $0x38] sm:$0xff]  ;;  %v44_v25 = vld [vmem:[%s2499_s0 + $0x60] sm:$0xff] }
   0x8   :  { %1749 = vmatmul.mubr.msk.f32.gmra.mrb[2].mxu0 %vm72_vm1, %v35_v4  ;;  %1996 = vmatpush3.bf16.msra.mxu1 %v1993_v12  ;;  %v43_v23 = vld [vmem:[%s2499_s0 + $0x58] sm:$0xff]  ;;  %v2005_v24 = vpack.c.bf16 %v437_v22, %v436_v21  ;;  %v438_v26 = vld [vmem:[%s2502_s3 + $0x40] sm:$0xff]  ;;  %v439_v27 = vld [vmem:[%s2502_s3 + $0x48] sm:$0xff] }
   0x9   :  { %1751 = vmatprep.mubr.msk.f32.mxu0 %vm72_vm1, %v36_v5  ;;  %1998 = vmatprep.subr.bf16.mxu1 %v1997_v15  ;;  %v45_v28 = vld [vmem:[%s2499_s0 + $0x68] sm:$0xff]  ;;  %v2009_v29 = vpack.c.bf16 %v439_v27, %v438_v26  ;;  %v46_v30 = vld [vmem:[%s2499_s0 + $0x70] sm:$0xff]  ;;  %v441_v32 = vld [vmem:[%s2502_s3 + $0x58] sm:$0xff] }
   0xa   :  { %v440_v31 = vld [vmem:[%s2502_s3 + $0x50] sm:$0xff]  ;;  %v47_v33 = vld [vmem:[%s2499_s0 + $0x78] sm:$0xff]  ;;  %v48_v35 = vld [vmem:[%s2499_s0 + $0x80] sm:$0xff] }
   0xb   :  { %v2013_v34 = vpack.c.bf16 %v441_v32, %v440_v31  ;;  %v442_v36 = vld [vmem:[%s2502_s3 + $0x60] sm:$0xff]  ;;  %v443_v37 = vld [vmem:[%s2502_s3 + $0x68] sm:$0xff]  ;;  %v50_v40 = vld [vmem:[%s2499_s0 + $0x90] sm:$0xff] }
   0xc   :  { %1752 = vmatmul.mubr.msk.f32.gmra.mrb[4].mxu0 %vm72_vm1, %v37_v6  ;;  %2000 = vmatpush3.bf16.msra.mxu1 %v1997_v15  ;;  %v49_v38 = vld [vmem:[%s2499_s0 + $0x88] sm:$0xff]  ;;  %v2017_v39 = vpack.c.bf16 %v443_v37, %v442_v36  ;;  %v51_v41 = vld [vmem:[%s2499_s0 + $0x98] sm:$0xff]  ;;  %v52_v42 = vld [vmem:[%s2499_s0 + $0xa0] sm:$0xff] }
   0xd   :  { %1754 = vmatprep.mubr.msk.f32.mxu0 %vm72_vm1, %v38_v7  ;;  %2002 = vmatprep.subr.bf16.mxu1 %v2001_v19  ;;  %v53_v43 = vld [vmem:[%s2499_s0 + $0xa8] sm:$0xff]  ;;  %v54_v44 = vld [vmem:[%s2499_s0 + $0xb0] sm:$0xff]  ;;  %v55_v45 = vld [vmem:[%s2499_s0 + $0xb8] sm:$0xff] }
   0xe   :  { %v56_v46 = vld [vmem:[%s2499_s0 + $0xc0] sm:$0xff]  ;;  %v57_v47 = vld [vmem:[%s2499_s0 + $0xc8] sm:$0xff]  ;;  %v58_v48 = vld [vmem:[%s2499_s0 + $0xd0] sm:$0xff] }
   0xf   :  { %v59_v49 = vld [vmem:[%s2499_s0 + $0xd8] sm:$0xff]  ;;  %v60_v50 = vld [vmem:[%s2499_s0 + $0xe0] sm:$0xff]  ;;  %v61_v51 = vld [vmem:[%s2499_s0 + $0xe8] sm:$0xff] }
  0x10   :  { %1755 = vmatmul.mubr.msk.f32.gmra.mrb[6].mxu0 %vm72_vm1, %v39_v11  ;;  %2004 = vmatpush3.bf16.msra.mxu1 %v2001_v19  ;;  %v62_v52 = vld [vmem:[%s2499_s0 + $0xf0] sm:$0xff]  ;;  %v63_v53 = vld [vmem:[%s2499_s0 + $0xf8] sm:$0xff]  ;;  %v710_v57 = vld [vmem:[%s2504_s5] sm:$0xff] }
  0x11   :  { %1757 = vmatprep.mubr.msk.f32.mxu0 %vm72_vm1, %v40_v14  ;;  %2006 = vmatprep.subr.bf16.mxu1 %v2005_v24  ;;  %v444_v54 = vld [vmem:[%s2502_s3 + $0x70] sm:$0xff]  ;;  %v445_v55 = vld [vmem:[%s2502_s3 + $0x78] sm:$0xff]  ;;  %v711_v58 = vld [vmem:[%s2504_s5 + $0x8] sm:$0xff] }
  0x12   :  { %v2021_v56 = vpack.c.bf16 %v445_v55, %v444_v54  ;;  %v712_v59 = vld [vmem:[%s2504_s5 + $0x10] sm:$0xff]  ;;  %v2025_v60 = vpack.c.bf16 %v711_v58, %v710_v57  ;;  %v713_v61 = vld [vmem:[%s2504_s5 + $0x18] sm:$0xff]  ;;  %v714_v63 = vld [vmem:[%s2504_s5 + $0x20] sm:$0xff] }
  0x13   :  { %v2029_v62 = vpack.c.bf16 %v713_v61, %v712_v59  ;;  %v715_v0 = vld [vmem:[%s2504_s5 + $0x28] sm:$0xff]  ;;  %v716_v2 = vld [vmem:[%s2504_s5 + $0x30] sm:$0xff]  ;;  %v717_v3 = vld [vmem:[%s2504_s5 + $0x38] sm:$0xff] }
  0x14   :  { %1758 = vmatmul.mubr.msk.f32.gmra.mrb[8].mxu0 %vm72_vm1, %v41_v18  ;;  %2008 = vmatpush3.bf16.msra.mxu1 %v2005_v24  ;;  %v2033_v1 = vpack.c.bf16 %v715_v0, %v714_v63  ;;  %v2037_v4 = vpack.c.bf16 %v717_v3, %v716_v2  ;;  %v2309_v5 = vld [vmem:[%s2501_s2] ss:$0 sm:$0xff] }
  0x15   :  { %1760 = vmatprep.mubr.msk.f32.mxu0 %vm72_vm1, %v42_v20  ;;  %2010 = vmatprep.subr.bf16.mxu1 %v2009_v29 }
  0x16   :  { %2026 = vmatprep.subr.bf16.mxu0 %v2025_v60 }
  0x17   :  { %2028 = vmatpush3.bf16.msra.mxu0 %v2025_v60 }
  0x18   :  { %1761 = vmatmul.mubr.msk.f32.gmra.mrb[10].mxu0 %vm72_vm1, %v43_v23  ;;  %2012 = vmatpush3.bf16.msra.mxu1 %v2009_v29 }
  0x19   :  { %1763 = vmatprep.mubr.msk.f32.mxu0 %vm72_vm1, %v44_v25  ;;  %2014 = vmatprep.subr.bf16.mxu1 %v2013_v34 }
  0x1a   :  { %2030 = vmatprep.subr.bf16.mxu0 %v2029_v62 }
  0x1b   :  { %2032 = vmatpush3.bf16.msra.mxu0 %v2029_v62 }
  0x1c   :  { %1764 = vmatmul.mubr.msk.f32.gmra.mrb[12].mxu0 %vm72_vm1, %v45_v28  ;;  %2016 = vmatpush3.bf16.msra.mxu1 %v2013_v34 }
  0x1d   :  { %1766 = vmatprep.mubr.msk.f32.mxu0 %vm72_vm1, %v46_v30  ;;  %2018 = vmatprep.subr.bf16.mxu1 %v2017_v39 }
  0x1e   :  { %2034 = vmatprep.subr.bf16.mxu0 %v2033_v1 }
  0x1f   :  { %2036 = vmatpush3.bf16.msra.mxu0 %v2033_v1 }
  0x20   :  { %1767 = vmatmul.mubr.msk.f32.gmra.mrb[14].mxu0 %vm72_vm1, %v47_v33  ;;  %2020 = vmatpush3.bf16.msra.mxu1 %v2017_v39 }
  0x21   :  { %1769 = vmatprep.mubr.msk.f32.mxu0 %vm72_vm1, %v48_v35  ;;  %2022 = vmatprep.subr.bf16.mxu1 %v2021_v56 }
  0x22   :  { %2038 = vmatprep.subr.bf16.mxu0 %v2037_v4 }
  0x23   :  { %2040 = vmatpush3.bf16.msra.mxu0 %v2037_v4 }
  0x24   :  { %1770 = vmatmul.mubr.msk.f32.gmra.mrb[16].mxu0 %vm72_vm1, %v49_v38  ;;  %2024 = vmatpush3.bf16.msra.mxu1 %v2021_v56 }
  0x25   :  { %1772 = vmatprep.mubr.msk.f32.mxu0 %vm72_vm1, %v50_v40 }
  0x28   :  { %1773 = vmatmul.mubr.msk.f32.gmra.mrb[18].mxu0 %vm72_vm1, %v51_v41 }
  0x29   :  { %1775 = vmatprep.mubr.msk.f32.mxu0 %vm72_vm1, %v52_v42 }
  0x2c   :  { %1776 = vmatmul.mubr.msk.f32.gmra.mrb[20].mxu0 %vm72_vm1, %v53_v43 }
  0x2d   :  { %1778 = vmatprep.mubr.msk.f32.mxu0 %vm72_vm1, %v54_v44 }
  0x30   :  { %1779 = vmatmul.mubr.msk.f32.gmra.mrb[22].mxu0 %vm72_vm1, %v55_v45 }
  0x31   :  { %1781 = vmatprep.mubr.msk.f32.mxu0 %vm72_vm1, %v56_v46 }
  0x34   :  { %1782 = vmatmul.mubr.msk.f32.gmra.mrb[24].mxu0 %vm72_vm1, %v57_v47 }
  0x35   :  { %1784 = vmatprep.mubr.msk.f32.mxu0 %vm72_vm1, %v58_v48 }
  0x38   :  { %1785 = vmatmul.mubr.msk.f32.gmra.mrb[26].mxu0 %vm72_vm1, %v59_v49 }
  0x39   :  { %1787 = vmatprep.mubr.msk.f32.mxu0 %vm72_vm1, %v60_v50 }
  0x3c   :  { %1788 = vmatmul.mubr.msk.f32.gmra.mrb[28].mxu0 %vm72_vm1, %v61_v51 }
  0x3d   :  { %1790 = vmatprep.mubr.msk.f32.mxu0 %vm72_vm1, %v62_v52 }
  0x40   :  { %1791 = vmatmul.mubr.msk.f32.gmra.mrb[30].mxu0 %vm72_vm1, %v63_v53 }
  0xd7   :  { %v1747_v6 = vpop.f32.mrb[0].mxu0 }
  0xd8   :  { %v245_v7 = vadd.f32 %v1747_v6, %v2309_v5  ;;  %v239_v8 = vpop.f32.mrb[1].mxu0 }
  0xd9   :  { %v240_v9 = vadd.f32 %v2309_v5, %v239_v8 }
  0xda   :  { %v399_v12 = vmax.f32 %v245_v7, 0.0 }
  0xdb   :  { %v1750_v10 = vpop.f32.mrb[2].mxu0  ;;  %v398_v11 = vmax.f32 %v240_v9, 0.0 }
  0xdc   :  { %v255_v13 = vadd.f32 %v1750_v10, %v2309_v5  ;;  %v249_v14 = vpop.f32.mrb[3].mxu0 }
  0xdd   :  { %v250_v15 = vadd.f32 %v2309_v5, %v249_v14  ;;  %1825 = vmatprep.mubr.f32.mxu1 %v398_v11 }
  0xde   :  { %1826 = vmatmul.mubr.f32.vlgmr.msra.gmra.mrb[0].mxu1 %v399_v12  ;;  %v401_v18 = vmax.f32 %v255_v13, 0.0 }
  0xdf   :  { %v400_v16 = vmax.f32 %v250_v15, 0.0  ;;  %v1753_v17 = vpop.f32.mrb[4].mxu0 }
  0xe0   :  { %v265_v19 = vadd.f32 %v1753_v17, %v2309_v5  ;;  %v259_v20 = vpop.f32.mrb[5].mxu0 }
  0xe1   :  { %v260_v21 = vadd.f32 %v2309_v5, %v259_v20  ;;  %1828 = vmatprep.mubr.f32.mxu1 %v400_v16 }
  0xe2   :  { %1829 = vmatmul.mubr.f32.gmra.mrb[2].mxu1 %v401_v18  ;;  %v403_v24 = vmax.f32 %v265_v19, 0.0 }
  0xe3   :  { %v402_v22 = vmax.f32 %v260_v21, 0.0  ;;  %v1756_v23 = vpop.f32.mrb[6].mxu0 }
  0xe4   :  { %v275_v25 = vadd.f32 %v1756_v23, %v2309_v5  ;;  %v269_v26 = vpop.f32.mrb[7].mxu0 }
  0xe5   :  { %v270_v27 = vadd.f32 %v2309_v5, %v269_v26  ;;  %1831 = vmatprep.mubr.f32.mxu1 %v402_v22 }
  0xe6   :  { %1832 = vmatmul.mubr.f32.gmra.mrb[4].mxu1 %v403_v24  ;;  %v405_v30 = vmax.f32 %v275_v25, 0.0 }
  0xe7   :  { %v404_v28 = vmax.f32 %v270_v27, 0.0  ;;  %v1759_v29 = vpop.f32.mrb[8].mxu0 }
  0xe8   :  { %v285_v31 = vadd.f32 %v1759_v29, %v2309_v5  ;;  %v279_v32 = vpop.f32.mrb[9].mxu0 }
  0xe9   :  { %v280_v33 = vadd.f32 %v2309_v5, %v279_v32  ;;  %1834 = vmatprep.mubr.f32.mxu1 %v404_v28 }
  0xea   :  { %1835 = vmatmul.mubr.f32.gmra.mrb[6].mxu1 %v405_v30  ;;  %v407_v36 = vmax.f32 %v285_v31, 0.0 }
  0xeb   :  { %v406_v34 = vmax.f32 %v280_v33, 0.0  ;;  %v1762_v35 = vpop.f32.mrb[10].mxu0 }
  0xec   :  { %v295_v37 = vadd.f32 %v1762_v35, %v2309_v5  ;;  %v289_v38 = vpop.f32.mrb[11].mxu0 }
  0xed   :  { %v290_v39 = vadd.f32 %v2309_v5, %v289_v38  ;;  %1837 = vmatprep.mubr.f32.mxu1 %v406_v34 }
  0xee   :  { %1838 = vmatmul.mubr.f32.gmra.mrb[8].mxu1 %v407_v36  ;;  %v409_v42 = vmax.f32 %v295_v37, 0.0 }
  0xef   :  { %v408_v40 = vmax.f32 %v290_v39, 0.0  ;;  %v1765_v41 = vpop.f32.mrb[12].mxu0  ;;  %v1079_v39 = vld [vmem:[%s2506_s7] sm:$0xff] }
  0xf0   :  { %v305_v43 = vadd.f32 %v1765_v41, %v2309_v5  ;;  %v299_v44 = vpop.f32.mrb[13].mxu0  ;;  %v1081_v41 = vld [vmem:[%s2506_s7 + $0x10] sm:$0xff] }
  0xf1   :  { %v300_v45 = vadd.f32 %v2309_v5, %v299_v44  ;;  %1840 = vmatprep.mubr.f32.mxu1 %v408_v40  ;;  %v1080_v40 = vld [vmem:[%s2506_s7 + $0x8] sm:$0xff]  ;;  %v2358_v44 = vld [vmem:[%s2503_s4] ss:$0 sm:$0xff] }
  0xf2   :  { %1841 = vmatmul.mubr.f32.gmra.mrb[10].mxu1 %v409_v42  ;;  %v411_v48 = vmax.f32 %v305_v43, 0.0  ;;  %v2041_v42 = vpack.c.bf16 %v1080_v40, %v1079_v39 }
  0xf3   :  { %v410_v46 = vmax.f32 %v300_v45, 0.0  ;;  %v1768_v47 = vpop.f32.mrb[14].mxu0 }
  0xf4   :  { %v315_v49 = vadd.f32 %v1768_v47, %v2309_v5  ;;  %v309_v50 = vpop.f32.mrb[15].mxu0  ;;  %2049 = vmatprep.subr.bf16.mxu1 %v2041_v42  ;;  %2042 = vmatprep.subr.bf16.mxu0 %v2041_v42 }
  0xf5   :  { %v310_v51 = vadd.f32 %v2309_v5, %v309_v50  ;;  %1843 = vmatprep.mubr.f32.mxu1 %v410_v46  ;;  %2051 = vmatpush3.bf16.msra.mxu1 %v2041_v42 }
  0xf6   :  { %1844 = vmatmul.mubr.f32.gmra.mrb[12].mxu1 %v411_v48  ;;  %v413_v54 = vmax.f32 %v315_v49, 0.0 }
  0xf7   :  { %v412_v52 = vmax.f32 %v310_v51, 0.0  ;;  %v1771_v53 = vpop.f32.mrb[16].mxu0 }
  0xf8   :  { %v325_v55 = vadd.f32 %v1771_v53, %v2309_v5  ;;  %v319_v56 = vpop.f32.mrb[17].mxu0 }
  0xf9   :  { %v320_v57 = vadd.f32 %v2309_v5, %v319_v56  ;;  %1846 = vmatprep.mubr.f32.mxu1 %v412_v52 }
  0xfa   :  { %1847 = vmatmul.mubr.f32.gmra.mrb[14].mxu1 %v413_v54  ;;  %v415_v60 = vmax.f32 %v325_v55, 0.0 }
  0xfb   :  { %v414_v58 = vmax.f32 %v320_v57, 0.0  ;;  %v1774_v59 = vpop.f32.mrb[18].mxu0 }
  0xfc   :  { %v335_v61 = vadd.f32 %v1774_v59, %v2309_v5  ;;  %v329_v62 = vpop.f32.mrb[19].mxu0 }
  0xfd   :  { %v330_v63 = vadd.f32 %v2309_v5, %v329_v62  ;;  %1849 = vmatprep.mubr.f32.mxu1 %v414_v58 }
  0xfe   :  { %1850 = vmatmul.mubr.f32.gmra.mrb[16].mxu1 %v415_v60  ;;  %v417_v2 = vmax.f32 %v335_v61, 0.0 }
  0xff   :  { %v416_v0 = vmax.f32 %v330_v63, 0.0  ;;  %v1777_v1 = vpop.f32.mrb[20].mxu0 }
 0x100   :  { %v345_v3 = vadd.f32 %v1777_v1, %v2309_v5  ;;  %v339_v4 = vpop.f32.mrb[21].mxu0 }
 0x101   :  { %v340_v6 = vadd.f32 %v2309_v5, %v339_v4  ;;  %1852 = vmatprep.mubr.f32.mxu1 %v416_v0 }
 0x102   :  { %1853 = vmatmul.mubr.f32.gmra.mrb[18].mxu1 %v417_v2  ;;  %v419_v9 = vmax.f32 %v345_v3, 0.0 }
 0x103   :  { %v418_v7 = vmax.f32 %v340_v6, 0.0  ;;  %v1780_v8 = vpop.f32.mrb[22].mxu0 }
 0x104   :  { %v355_v10 = vadd.f32 %v1780_v8, %v2309_v5  ;;  %v349_v11 = vpop.f32.mrb[23].mxu0 }
 0x105   :  { %v350_v12 = vadd.f32 %v2309_v5, %v349_v11  ;;  %1855 = vmatprep.mubr.f32.mxu1 %v418_v7 }
 0x106   :  { %1856 = vmatmul.mubr.f32.gmra.mrb[20].mxu1 %v419_v9  ;;  %v421_v15 = vmax.f32 %v355_v10, 0.0 }
 0x107   :  { %v420_v13 = vmax.f32 %v350_v12, 0.0  ;;  %v1783_v14 = vpop.f32.mrb[24].mxu0 }
 0x108   :  { %v365_v16 = vadd.f32 %v1783_v14, %v2309_v5  ;;  %v359_v17 = vpop.f32.mrb[25].mxu0 }
 0x109   :  { %v360_v18 = vadd.f32 %v2309_v5, %v359_v17  ;;  %1858 = vmatprep.mubr.f32.mxu1 %v420_v13 }
 0x10a   :  { %1859 = vmatmul.mubr.f32.gmra.mrb[22].mxu1 %v421_v15  ;;  %v423_v21 = vmax.f32 %v365_v16, 0.0 }
 0x10b   :  { %v422_v19 = vmax.f32 %v360_v18, 0.0  ;;  %v1786_v20 = vpop.f32.mrb[26].mxu0 }
 0x10c   :  { %v375_v22 = vadd.f32 %v1786_v20, %v2309_v5  ;;  %v369_v23 = vpop.f32.mrb[27].mxu0 }
 0x10d   :  { %v370_v24 = vadd.f32 %v2309_v5, %v369_v23  ;;  %1861 = vmatprep.mubr.f32.mxu1 %v422_v19 }
 0x10e   :  { %1862 = vmatmul.mubr.f32.gmra.mrb[24].mxu1 %v423_v21  ;;  %v425_v27 = vmax.f32 %v375_v22, 0.0 }
 0x10f   :  { %v424_v25 = vmax.f32 %v370_v24, 0.0  ;;  %v1789_v26 = vpop.f32.mrb[28].mxu0 }
 0x110   :  { %v385_v28 = vadd.f32 %v1789_v26, %v2309_v5  ;;  %v379_v29 = vpop.f32.mrb[29].mxu0 }
 0x111   :  { %v380_v30 = vadd.f32 %v2309_v5, %v379_v29  ;;  %1864 = vmatprep.mubr.f32.mxu1 %v424_v25 }
 0x112   :  { %1865 = vmatmul.mubr.f32.gmra.mrb[26].mxu1 %v425_v27  ;;  %v427_v33 = vmax.f32 %v385_v28, 0.0 }
 0x113   :  { %v426_v31 = vmax.f32 %v380_v30, 0.0  ;;  %v1792_v32 = vpop.f32.mrb[30].mxu0 }
 0x114   :  { %v395_v34 = vadd.f32 %v1792_v32, %v2309_v5  ;;  %v389_v35 = vpop.f32.mrb[31].mxu0 }
 0x115   :  { %v390_v36 = vadd.f32 %v2309_v5, %v389_v35  ;;  %1867 = vmatprep.mubr.f32.mxu1 %v426_v31  ;;  %v1082_v5 = vld [vmem:[%s2506_s7 + $0x18] sm:$0xff] }
 0x116   :  { %1868 = vmatmul.mubr.f32.gmra.mrb[28].mxu1 %v427_v33  ;;  %v429_v38 = vmax.f32 %v395_v34, 0.0  ;;  %v2045_v43 = vpack.c.bf16 %v1082_v5, %v1081_v41 }
 0x117   :  { %v428_v37 = vmax.f32 %v390_v36, 0.0 }
 0x118   :  { %2050 = vmatprep.subr.bf16.mxu1 %v2045_v43 }
 0x119   :  { %1870 = vmatprep.mubr.f32.mxu1 %v428_v37  ;;  %2052 = vmatpush3.bf16.msra.mxu1 %v2045_v43 }
 0x11a   :  { %1871 = vmatmul.mubr.f32.gmra.mrb[30].mxu1 %v429_v38 }
 0x1b1   :  { %v1827_v45 = vpop.f32.mrb[0].mxu1 }
 0x1b2   :  { %v525_v46 = vadd.f32 %v1827_v45, %v2358_v44  ;;  %v519_v47 = vpop.f32.mrb[1].mxu1 }
 0x1b3   :  { %v520_v48 = vadd.f32 %v2358_v44, %v519_v47 }
 0x1b4   :  { %v679_v51 = vmax.f32 %v525_v46, 0.0 }
 0x1b5   :  { %v678_v49 = vmax.f32 %v520_v48, 0.0  ;;  %v1830_v50 = vpop.f32.mrb[2].mxu1 }
 0x1b6   :  { %v535_v52 = vadd.f32 %v1830_v50, %v2358_v44  ;;  %v529_v53 = vpop.f32.mrb[3].mxu1 }
 0x1b7   :  { %v530_v54 = vadd.f32 %v2358_v44, %v529_v53  ;;  %1889 = vmatprep.mubr.msk.f32.mxu0 %vm725_vm2, %v678_v49 }
 0x1b8   :  { %1890 = vmatmul.mubr.msk.f32.vlgmr.msra.gmra.mrb[32].mxu0 %vm725_vm2, %v679_v51  ;;  %v681_v57 = vmax.f32 %v535_v52, 0.0 }
 0x1b9   :  { %v680_v55 = vmax.f32 %v530_v54, 0.0  ;;  %v1833_v56 = vpop.f32.mrb[4].mxu1  ;;  %2044 = vmatpush3.bf16.msra.mxu0 %v2041_v42 }
 0x1ba   :  { %v545_v58 = vadd.f32 %v1833_v56, %v2358_v44  ;;  %v539_v59 = vpop.f32.mrb[5].mxu1  ;;  %2046 = vmatprep.subr.bf16.mxu0 %v2045_v43 }
 0x1bb   :  { %v540_v60 = vadd.f32 %v2358_v44, %v539_v59  ;;  %1892 = vmatprep.mubr.msk.f32.mxu0 %vm725_vm2, %v680_v55 }
 0x1bc   :  { %1893 = vmatmul.mubr.msk.f32.gmra.mrb[34].mxu0 %vm725_vm2, %v681_v57  ;;  %v683_v63 = vmax.f32 %v545_v58, 0.0 }
 0x1bd   :  { %v682_v61 = vmax.f32 %v540_v60, 0.0  ;;  %v1836_v62 = vpop.f32.mrb[6].mxu1  ;;  %2048 = vmatpush3.bf16.msra.mxu0 %v2045_v43 }
 0x1be   :  { %v555_v0 = vadd.f32 %v1836_v62, %v2358_v44  ;;  %v549_v1 = vpop.f32.mrb[7].mxu1 }
 0x1bf   :  { %v550_v2 = vadd.f32 %v2358_v44, %v549_v1  ;;  %1895 = vmatprep.mubr.msk.f32.mxu0 %vm725_vm2, %v682_v61 }
 0x1c0   :  { %1896 = vmatmul.mubr.msk.f32.gmra.mrb[36].mxu0 %vm725_vm2, %v683_v63  ;;  %v685_v6 = vmax.f32 %v555_v0, 0.0 }
 0x1c1   :  { %v684_v3 = vmax.f32 %v550_v2, 0.0  ;;  %v1839_v4 = vpop.f32.mrb[8].mxu1 }
 0x1c2   :  { %v565_v7 = vadd.f32 %v1839_v4, %v2358_v44  ;;  %v559_v8 = vpop.f32.mrb[9].mxu1 }
 0x1c3   :  { %v560_v9 = vadd.f32 %v2358_v44, %v559_v8  ;;  %1898 = vmatprep.mubr.msk.f32.mxu0 %vm725_vm2, %v684_v3 }
 0x1c4   :  { %1899 = vmatmul.mubr.msk.f32.gmra.mrb[38].mxu0 %vm725_vm2, %v685_v6  ;;  %v687_v12 = vmax.f32 %v565_v7, 0.0 }
 0x1c5   :  { %v686_v10 = vmax.f32 %v560_v9, 0.0  ;;  %v1842_v11 = vpop.f32.mrb[10].mxu1 }
 0x1c6   :  { %v575_v13 = vadd.f32 %v1842_v11, %v2358_v44  ;;  %v569_v14 = vpop.f32.mrb[11].mxu1 }
 0x1c7   :  { %v570_v15 = vadd.f32 %v2358_v44, %v569_v14  ;;  %1901 = vmatprep.mubr.msk.f32.mxu0 %vm725_vm2, %v686_v10 }
 0x1c8   :  { %1902 = vmatmul.mubr.msk.f32.gmra.mrb[40].mxu0 %vm725_vm2, %v687_v12  ;;  %v689_v18 = vmax.f32 %v575_v13, 0.0 }
 0x1c9   :  { %v688_v16 = vmax.f32 %v570_v15, 0.0  ;;  %v1845_v17 = vpop.f32.mrb[12].mxu1  ;;  %v2427_v15 = vld [vmem:[%s2505_s6] ss:$0 sm:$0xff] }
 0x1ca   :  { %v585_v19 = vadd.f32 %v1845_v17, %v2358_v44  ;;  %v579_v20 = vpop.f32.mrb[13].mxu1 }
 0x1cb   :  { %v580_v21 = vadd.f32 %v2358_v44, %v579_v20  ;;  %1904 = vmatprep.mubr.msk.f32.mxu0 %vm725_vm2, %v688_v16 }
 0x1cc   :  { %1905 = vmatmul.mubr.msk.f32.gmra.mrb[42].mxu0 %vm725_vm2, %v689_v18  ;;  %v691_v24 = vmax.f32 %v585_v19, 0.0 }
 0x1cd   :  { %v690_v22 = vmax.f32 %v580_v21, 0.0  ;;  %v1848_v23 = vpop.f32.mrb[14].mxu1 }
 0x1ce   :  { %v595_v25 = vadd.f32 %v1848_v23, %v2358_v44  ;;  %v589_v26 = vpop.f32.mrb[15].mxu1 }
 0x1cf   :  { %v590_v27 = vadd.f32 %v2358_v44, %v589_v26  ;;  %1907 = vmatprep.mubr.msk.f32.mxu0 %vm725_vm2, %v690_v22 }
 0x1d0   :  { %1908 = vmatmul.mubr.msk.f32.gmra.mrb[44].mxu0 %vm725_vm2, %v691_v24  ;;  %v693_v30 = vmax.f32 %v595_v25, 0.0 }
 0x1d1   :  { %v692_v28 = vmax.f32 %v590_v27, 0.0  ;;  %v1851_v29 = vpop.f32.mrb[16].mxu1 }
 0x1d2   :  { %v605_v31 = vadd.f32 %v1851_v29, %v2358_v44  ;;  %v599_v32 = vpop.f32.mrb[17].mxu1 }
 0x1d3   :  { %v600_v33 = vadd.f32 %v2358_v44, %v599_v32  ;;  %1910 = vmatprep.mubr.msk.f32.mxu0 %vm725_vm2, %v692_v28 }
 0x1d4   :  { %1911 = vmatmul.mubr.msk.f32.gmra.mrb[46].mxu0 %vm725_vm2, %v693_v30  ;;  %v695_v36 = vmax.f32 %v605_v31, 0.0 }
 0x1d5   :  { %v694_v34 = vmax.f32 %v600_v33, 0.0  ;;  %v1854_v35 = vpop.f32.mrb[18].mxu1 }
 0x1d6   :  { %v615_v37 = vadd.f32 %v1854_v35, %v2358_v44  ;;  %v609_v38 = vpop.f32.mrb[19].mxu1 }
 0x1d7   :  { %v610_v39 = vadd.f32 %v2358_v44, %v609_v38  ;;  %1913 = vmatprep.mubr.msk.f32.mxu0 %vm725_vm2, %v694_v34 }
 0x1d8   :  { %1914 = vmatmul.mubr.msk.f32.gmra.mrb[48].mxu0 %vm725_vm2, %v695_v36  ;;  %v697_v42 = vmax.f32 %v615_v37, 0.0 }
 0x1d9   :  { %v696_v40 = vmax.f32 %v610_v39, 0.0  ;;  %v1857_v41 = vpop.f32.mrb[20].mxu1 }
 0x1da   :  { %v625_v5 = vadd.f32 %v1857_v41, %v2358_v44  ;;  %v619_v43 = vpop.f32.mrb[21].mxu1 }
 0x1db   :  { %v620_v45 = vadd.f32 %v2358_v44, %v619_v43  ;;  %1916 = vmatprep.mubr.msk.f32.mxu0 %vm725_vm2, %v696_v40 }
 0x1dc   :  { %1917 = vmatmul.mubr.msk.f32.gmra.mrb[50].mxu0 %vm725_vm2, %v697_v42  ;;  %v699_v48 = vmax.f32 %v625_v5, 0.0 }
 0x1dd   :  { %v698_v46 = vmax.f32 %v620_v45, 0.0  ;;  %v1860_v47 = vpop.f32.mrb[22].mxu1 }
 0x1de   :  { %v635_v49 = vadd.f32 %v1860_v47, %v2358_v44  ;;  %v629_v50 = vpop.f32.mrb[23].mxu1 }
 0x1df   :  { %v630_v51 = vadd.f32 %v2358_v44, %v629_v50  ;;  %1919 = vmatprep.mubr.msk.f32.mxu0 %vm725_vm2, %v698_v46 }
 0x1e0   :  { %1920 = vmatmul.mubr.msk.f32.gmra.mrb[52].mxu0 %vm725_vm2, %v699_v48  ;;  %v701_v54 = vmax.f32 %v635_v49, 0.0 }
 0x1e1   :  { %v700_v52 = vmax.f32 %v630_v51, 0.0  ;;  %v1863_v53 = vpop.f32.mrb[24].mxu1 }
 0x1e2   :  { %v645_v55 = vadd.f32 %v1863_v53, %v2358_v44  ;;  %v639_v56 = vpop.f32.mrb[25].mxu1 }
 0x1e3   :  { %v640_v57 = vadd.f32 %v2358_v44, %v639_v56  ;;  %1922 = vmatprep.mubr.msk.f32.mxu0 %vm725_vm2, %v700_v52 }
 0x1e4   :  { %1923 = vmatmul.mubr.msk.f32.gmra.mrb[54].mxu0 %vm725_vm2, %v701_v54  ;;  %v703_v60 = vmax.f32 %v645_v55, 0.0 }
 0x1e5   :  { %v702_v58 = vmax.f32 %v640_v57, 0.0  ;;  %v1866_v59 = vpop.f32.mrb[26].mxu1 }
 0x1e6   :  { %v655_v61 = vadd.f32 %v1866_v59, %v2358_v44  ;;  %v649_v62 = vpop.f32.mrb[27].mxu1 }
 0x1e7   :  { %v650_v63 = vadd.f32 %v2358_v44, %v649_v62  ;;  %1925 = vmatprep.mubr.msk.f32.mxu0 %vm725_vm2, %v702_v58 }
 0x1e8   :  { %1926 = vmatmul.mubr.msk.f32.gmra.mrb[56].mxu0 %vm725_vm2, %v703_v60  ;;  %v705_v2 = vmax.f32 %v655_v61, 0.0 }
 0x1e9   :  { %v704_v0 = vmax.f32 %v650_v63, 0.0  ;;  %v1869_v1 = vpop.f32.mrb[28].mxu1 }
 0x1ea   :  { %v665_v3 = vadd.f32 %v1869_v1, %v2358_v44  ;;  %v659_v4 = vpop.f32.mrb[29].mxu1 }
 0x1eb   :  { %v660_v6 = vadd.f32 %v2358_v44, %v659_v4  ;;  %1928 = vmatprep.mubr.msk.f32.mxu0 %vm725_vm2, %v704_v0 }
 0x1ec   :  { %1929 = vmatmul.mubr.msk.f32.gmra.mrb[58].mxu0 %vm725_vm2, %v705_v2  ;;  %v707_v9 = vmax.f32 %v665_v3, 0.0 }
 0x1ed   :  { %v706_v7 = vmax.f32 %v660_v6, 0.0  ;;  %v1872_v8 = vpop.f32.mrb[30].mxu1 }
 0x1ee   :  { %v675_v10 = vadd.f32 %v1872_v8, %v2358_v44  ;;  %v669_v11 = vpop.f32.mrb[31].mxu1 }
 0x1ef   :  { %v670_v12 = vadd.f32 %v2358_v44, %v669_v11  ;;  %1931 = vmatprep.mubr.msk.f32.mxu0 %vm725_vm2, %v706_v7 }
 0x1f0   :  { %1932 = vmatmul.mubr.msk.f32.gmra.mrb[60].mxu0 %vm725_vm2, %v707_v9  ;;  %v709_v14 = vmax.f32 %v675_v10, 0.0 }
 0x1f1   :  { %v708_v13 = vmax.f32 %v670_v12, 0.0 }
 0x1f3   :  { %1934 = vmatprep.mubr.msk.f32.mxu0 %vm725_vm2, %v708_v13 }
 0x1f4   :  { %1935 = vmatmul.mubr.msk.f32.gmra.mrb[62].mxu0 %vm725_vm2, %v709_v14 }
 0x28b   :  { %v1891_v16 = vpop.f32.mrb[32].mxu0 }
 0x28c   :  { %v894_v17 = vadd.f32 %v1891_v16, %v2427_v15  ;;  %v888_v18 = vpop.f32.mrb[33].mxu0 }
 0x28d   :  { %v889_v44 = vadd.f32 %v2427_v15, %v888_v18 }
 0x28e   :  { %v1048_v21 = vmax.f32 %v894_v17, 0.0 }
 0x28f   :  { %v1047_v19 = vmax.f32 %v889_v44, 0.0  ;;  %v1894_v20 = vpop.f32.mrb[34].mxu0 }
 0x290   :  { %v904_v22 = vadd.f32 %v1894_v20, %v2427_v15  ;;  %v898_v23 = vpop.f32.mrb[35].mxu0 }
 0x291   :  { %v899_v24 = vadd.f32 %v2427_v15, %v898_v23  ;;  %1945 = vmatprep.mubr.msk.f32.mxu0 %vm1090_vm3, %v1047_v19 }
 0x292   :  { %1946 = vmatmul.mubr.msk.f32.vlgmr.msra.gmra.mrb[64].mxu0 %vm1090_vm3, %v1048_v21  ;;  %v1050_v27 = vmax.f32 %v904_v22, 0.0 }
 0x293   :  { %v1049_v25 = vmax.f32 %v899_v24, 0.0  ;;  %v1897_v26 = vpop.f32.mrb[36].mxu0 }
 0x294   :  { %v914_v28 = vadd.f32 %v1897_v26, %v2427_v15  ;;  %v908_v29 = vpop.f32.mrb[37].mxu0 }
 0x295   :  { %v909_v30 = vadd.f32 %v2427_v15, %v908_v29  ;;  %1948 = vmatprep.mubr.msk.f32.mxu0 %vm1090_vm3, %v1049_v25 }
 0x296   :  { %1949 = vmatmul.mubr.msk.f32.gmra.mrb[66].mxu0 %vm1090_vm3, %v1050_v27  ;;  %v1052_v33 = vmax.f32 %v914_v28, 0.0 }
 0x297   :  { %v1051_v31 = vmax.f32 %v909_v30, 0.0  ;;  %v1900_v32 = vpop.f32.mrb[38].mxu0 }
 0x298   :  { %v924_v34 = vadd.f32 %v1900_v32, %v2427_v15  ;;  %v918_v35 = vpop.f32.mrb[39].mxu0 }
 0x299   :  { %v919_v36 = vadd.f32 %v2427_v15, %v918_v35  ;;  %1951 = vmatprep.mubr.msk.f32.mxu0 %vm1090_vm3, %v1051_v31 }
 0x29a   :  { %1952 = vmatmul.mubr.msk.f32.gmra.mrb[68].mxu0 %vm1090_vm3, %v1052_v33  ;;  %v1054_v39 = vmax.f32 %v924_v34, 0.0 }
 0x29b   :  { %v1053_v37 = vmax.f32 %v919_v36, 0.0  ;;  %v1903_v38 = vpop.f32.mrb[40].mxu0 }
 0x29c   :  { %v934_v40 = vadd.f32 %v1903_v38, %v2427_v15  ;;  %v928_v41 = vpop.f32.mrb[41].mxu0 }
 0x29d   :  { %v929_v42 = vadd.f32 %v2427_v15, %v928_v41  ;;  %1954 = vmatprep.mubr.msk.f32.mxu1 %vm1090_vm3, %v1053_v37 }
 0x29e   :  { %1955 = vmatmul.mubr.msk.f32.vlgmr.msra.gmra.mrb[32].mxu1 %vm1090_vm3, %v1054_v39  ;;  %v1056_v45 = vmax.f32 %v934_v40, 0.0 }
 0x29f   :  { %v1055_v5 = vmax.f32 %v929_v42, 0.0  ;;  %v1906_v43 = vpop.f32.mrb[42].mxu0 }
 0x2a0   :  { %v944_v46 = vadd.f32 %v1906_v43, %v2427_v15  ;;  %v938_v47 = vpop.f32.mrb[43].mxu0 }
 0x2a1   :  { %v939_v48 = vadd.f32 %v2427_v15, %v938_v47  ;;  %1957 = vmatprep.mubr.msk.f32.mxu1 %vm1090_vm3, %v1055_v5 }
 0x2a2   :  { %1958 = vmatmul.mubr.msk.f32.gmra.mrb[34].mxu1 %vm1090_vm3, %v1056_v45  ;;  %v1058_v51 = vmax.f32 %v944_v46, 0.0 }
 0x2a3   :  { %v1057_v49 = vmax.f32 %v939_v48, 0.0  ;;  %v1909_v50 = vpop.f32.mrb[44].mxu0  ;;  %v1553_v48 = vld [vmem:[%s2507_s8] ss:$0 sm:$0xff] }
 0x2a4   :  { %v954_v52 = vadd.f32 %v1909_v50, %v2427_v15  ;;  %v948_v53 = vpop.f32.mrb[45].mxu0 }
 0x2a5   :  { %v949_v54 = vadd.f32 %v2427_v15, %v948_v53  ;;  %1960 = vmatprep.mubr.msk.f32.mxu1 %vm1090_vm3, %v1057_v49 }
 0x2a6   :  { %1961 = vmatmul.mubr.msk.f32.gmra.mrb[36].mxu1 %vm1090_vm3, %v1058_v51  ;;  %v1060_v57 = vmax.f32 %v954_v52, 0.0 }
 0x2a7   :  { %v1059_v55 = vmax.f32 %v949_v54, 0.0  ;;  %v1912_v56 = vpop.f32.mrb[46].mxu0 }
 0x2a8   :  { %v964_v58 = vadd.f32 %v1912_v56, %v2427_v15  ;;  %v958_v59 = vpop.f32.mrb[47].mxu0 }
 0x2a9   :  { %v959_v60 = vadd.f32 %v2427_v15, %v958_v59  ;;  %1963 = vmatprep.mubr.msk.f32.mxu1 %vm1090_vm3, %v1059_v55 }
 0x2aa   :  { %1964 = vmatmul.mubr.msk.f32.gmra.mrb[38].mxu1 %vm1090_vm3, %v1060_v57  ;;  %v1062_v63 = vmax.f32 %v964_v58, 0.0 }
 0x2ab   :  { %v1061_v61 = vmax.f32 %v959_v60, 0.0  ;;  %v1915_v62 = vpop.f32.mrb[48].mxu0 }
 0x2ac   :  { %v974_v0 = vadd.f32 %v1915_v62, %v2427_v15  ;;  %v968_v1 = vpop.f32.mrb[49].mxu0 }
 0x2ad   :  { %v969_v2 = vadd.f32 %v2427_v15, %v968_v1  ;;  %1966 = vmatprep.mubr.msk.f32.mxu1 %vm1090_vm3, %v1061_v61 }
 0x2ae   :  { %1967 = vmatmul.mubr.msk.f32.gmra.mrb[40].mxu1 %vm1090_vm3, %v1062_v63  ;;  %v1064_v6 = vmax.f32 %v974_v0, 0.0 }
 0x2af   :  { %v1063_v3 = vmax.f32 %v969_v2, 0.0  ;;  %v1918_v4 = vpop.f32.mrb[50].mxu0 }
 0x2b0   :  { %v984_v7 = vadd.f32 %v1918_v4, %v2427_v15  ;;  %v978_v8 = vpop.f32.mrb[51].mxu0 }
 0x2b1   :  { %v979_v9 = vadd.f32 %v2427_v15, %v978_v8  ;;  %1969 = vmatprep.mubr.msk.f32.mxu1 %vm1090_vm3, %v1063_v3 }
 0x2b2   :  { %1970 = vmatmul.mubr.msk.f32.gmra.mrb[42].mxu1 %vm1090_vm3, %v1064_v6  ;;  %v1066_v12 = vmax.f32 %v984_v7, 0.0 }
 0x2b3   :  { %v1065_v10 = vmax.f32 %v979_v9, 0.0  ;;  %v1921_v11 = vpop.f32.mrb[52].mxu0 }
 0x2b4   :  { %v994_v13 = vadd.f32 %v1921_v11, %v2427_v15  ;;  %v988_v14 = vpop.f32.mrb[53].mxu0 }
 0x2b5   :  { %v989_v16 = vadd.f32 %v2427_v15, %v988_v14  ;;  %1972 = vmatprep.mubr.msk.f32.mxu1 %vm1090_vm3, %v1065_v10 }
 0x2b6   :  { %1973 = vmatmul.mubr.msk.f32.gmra.mrb[44].mxu1 %vm1090_vm3, %v1066_v12  ;;  %v1068_v44 = vmax.f32 %v994_v13, 0.0 }
 0x2b7   :  { %v1067_v17 = vmax.f32 %v989_v16, 0.0  ;;  %v1924_v18 = vpop.f32.mrb[54].mxu0 }
 0x2b8   :  { %v1004_v19 = vadd.f32 %v1924_v18, %v2427_v15  ;;  %v998_v20 = vpop.f32.mrb[55].mxu0 }
 0x2b9   :  { %v999_v21 = vadd.f32 %v2427_v15, %v998_v20  ;;  %1975 = vmatprep.mubr.msk.f32.mxu1 %vm1090_vm3, %v1067_v17 }
 0x2ba   :  { %1976 = vmatmul.mubr.msk.f32.gmra.mrb[46].mxu1 %vm1090_vm3, %v1068_v44  ;;  %v1070_v24 = vmax.f32 %v1004_v19, 0.0 }
 0x2bb   :  { %v1069_v22 = vmax.f32 %v999_v21, 0.0  ;;  %v1927_v23 = vpop.f32.mrb[56].mxu0 }
 0x2bc   :  { %v1014_v25 = vadd.f32 %v1927_v23, %v2427_v15  ;;  %v1008_v26 = vpop.f32.mrb[57].mxu0 }
 0x2bd   :  { %v1009_v27 = vadd.f32 %v2427_v15, %v1008_v26  ;;  %1978 = vmatprep.mubr.msk.f32.mxu1 %vm1090_vm3, %v1069_v22 }
 0x2be   :  { %1979 = vmatmul.mubr.msk.f32.gmra.mrb[48].mxu1 %vm1090_vm3, %v1070_v24  ;;  %v1072_v30 = vmax.f32 %v1014_v25, 0.0 }
 0x2bf   :  { %v1071_v28 = vmax.f32 %v1009_v27, 0.0  ;;  %v1930_v29 = vpop.f32.mrb[58].mxu0 }
 0x2c0   :  { %v1024_v31 = vadd.f32 %v1930_v29, %v2427_v15  ;;  %v1018_v32 = vpop.f32.mrb[59].mxu0 }
 0x2c1   :  { %v1019_v33 = vadd.f32 %v2427_v15, %v1018_v32  ;;  %1981 = vmatprep.mubr.msk.f32.mxu1 %vm1090_vm3, %v1071_v28 }
 0x2c2   :  { %1982 = vmatmul.mubr.msk.f32.gmra.mrb[50].mxu1 %vm1090_vm3, %v1072_v30  ;;  %v1074_v36 = vmax.f32 %v1024_v31, 0.0 }
 0x2c3   :  { %v1073_v34 = vmax.f32 %v1019_v33, 0.0  ;;  %v1933_v35 = vpop.f32.mrb[60].mxu0 }
 0x2c4   :  { %v1034_v37 = vadd.f32 %v1933_v35, %v2427_v15  ;;  %v1028_v38 = vpop.f32.mrb[61].mxu0 }
 0x2c5   :  { %v1029_v39 = vadd.f32 %v2427_v15, %v1028_v38  ;;  %1984 = vmatprep.mubr.msk.f32.mxu1 %vm1090_vm3, %v1073_v34 }
 0x2c6   :  { %1985 = vmatmul.mubr.msk.f32.gmra.mrb[52].mxu1 %vm1090_vm3, %v1074_v36  ;;  %v1076_v42 = vmax.f32 %v1034_v37, 0.0 }
 0x2c7   :  { %v1075_v40 = vmax.f32 %v1029_v39, 0.0  ;;  %v1936_v41 = vpop.f32.mrb[62].mxu0 }
 0x2c8   :  { %v1044_v5 = vadd.f32 %v1936_v41, %v2427_v15  ;;  %v1038_v43 = vpop.f32.mrb[63].mxu0 }
 0x2c9   :  { %v1039_v45 = vadd.f32 %v2427_v15, %v1038_v43  ;;  %1987 = vmatprep.mubr.msk.f32.mxu1 %vm1090_vm3, %v1075_v40 }
 0x2ca   :  { %1988 = vmatmul.mubr.msk.f32.gmra.mrb[54].mxu1 %vm1090_vm3, %v1076_v42  ;;  %v1078_v47 = vmax.f32 %v1044_v5, 0.0 }
 0x2cb   :  { %v1077_v46 = vmax.f32 %v1039_v45, 0.0 }
 0x2cd   :  { %1990 = vmatprep.mubr.msk.f32.mxu1 %vm1090_vm3, %v1077_v46 }
 0x2ce   :  { %1991 = vmatmul.mubr.msk.f32.gmra.mrb[56].mxu1 %vm1090_vm3, %v1078_v47 }
 0x365   :  { %v1947_v49 = vpop.f32.mrb[64].mxu0 }
 0x366   :  { %v1253_v50 = vpop.f32.mrb[65].mxu0 }
 0x367   :  { %v1254_v51 = vadd.f32 %v1553_v48, %v1253_v50 }
 0x369   :  { %1413 = vst.msk [vmem:[#allocation2] sm:$0xff] %vm1412_vm4, %v1254_v51  ;;  %v1950_v15 = vpop.f32.mrb[66].mxu0 }
 0x36a   :  { %v1263_v52 = vpop.f32.mrb[67].mxu0 }
 0x36d   :  { %v1953_v53 = vpop.f32.mrb[68].mxu0 }
 0x36e   :  { %v1273_v54 = vpop.f32.mrb[69].mxu0 }
 0x370   :  { %v1474_v55 = vld [vmem:[#allocation2] sm:$0xff] }
 0x371   :  { %1475 = vst [vmem:[%s2508_s9] sm:$0xff] %v1474_v55  ;;  %v1956_v56 = vpop.f32.mrb[32].mxu1 }
 0x372   :  { %v1283_v57 = vpop.f32.mrb[33].mxu1 }
 0x375   :  { %v1959_v58 = vpop.f32.mrb[34].mxu1 }
 0x376   :  { %v1293_v59 = vpop.f32.mrb[35].mxu1 }
 0x379   :  { %v1962_v60 = vpop.f32.mrb[36].mxu1 }
 0x37a   :  { %v1303_v61 = vpop.f32.mrb[37].mxu1 }
 0x37d   :  { %v1965_v62 = vpop.f32.mrb[38].mxu1 }
 0x37e   :  { %v1313_v63 = vpop.f32.mrb[39].mxu1 }
 0x381   :  { %v1968_v0 = vpop.f32.mrb[40].mxu1 }
 0x382   :  { %v1323_v1 = vpop.f32.mrb[41].mxu1 }
 0x385   :  { %v1971_v2 = vpop.f32.mrb[42].mxu1 }
 0x386   :  { %v1333_v3 = vpop.f32.mrb[43].mxu1 }
 0x389   :  { %v1974_v4 = vpop.f32.mrb[44].mxu1 }
 0x38a   :  { %v1343_v6 = vpop.f32.mrb[45].mxu1 }
 0x38d   :  { %v1977_v7 = vpop.f32.mrb[46].mxu1 }
 0x38e   :  { %v1353_v8 = vpop.f32.mrb[47].mxu1 }
 0x391   :  { %v1980_v9 = vpop.f32.mrb[48].mxu1 }
 0x392   :  { %v1363_v10 = vpop.f32.mrb[49].mxu1 }
 0x395   :  { %v1983_v11 = vpop.f32.mrb[50].mxu1 }
 0x396   :  { %v1373_v12 = vpop.f32.mrb[51].mxu1 }
 0x399   :  { %v1986_v13 = vpop.f32.mrb[52].mxu1 }
 0x39a   :  { %v1383_v14 = vpop.f32.mrb[53].mxu1 }
 0x39d   :  { %v1989_v16 = vpop.f32.mrb[54].mxu1 }
 0x39e   :  { %v1393_v17 = vpop.f32.mrb[55].mxu1 }
 0x3a1   :  { %v1992_v18 = vpop.f32.mrb[56].mxu1 }
 0x3a2   :  { %v1403_v44 = vpop.f32.mrb[57].mxu1 }

</bundles_post_ra>
